<compile_context>
chip_gen: v6e
topology: v6e:2x2x1
jax: 0.10.0
libtpu: 0.0.40
codegen_flags: <defaults>
</compile_context>

<pallas_src>
import functools

import jax
import jax.numpy as jnp
from jax.experimental import pallas as pl
from jax.experimental.pallas import tpu as pltpu


def _round_up(x, m):
    return ((x + m - 1) // m) * m


def _lora_ffn_kernel(x_ref, w13_ref, a13_ref, b13_ref, w2a2_ref, b2_ref,
                     out_ref, acc_ref, xa_ref):
    j = pl.program_id(1)
    last = pl.num_programs(1) - 1
    dim = out_ref.shape[-1]

    x = x_ref[...]                                   # (tm, dim), input dtype

    @pl.when(j == 0)
    def _():
        acc_ref[...] = jnp.zeros_like(acc_ref)
        # x @ [A1 | A3] (rank-padded, lane-dense) once per token tile; reused
        # across every hidden tile.
        xa_ref[...] = jnp.dot(x, a13_ref[...],
                              preferred_element_type=jnp.float32)

    # Fused gate/up projection for this hidden tile: one wide base matmul plus
    # one block-diagonal LoRA-B correction matmul, accumulated in f32.
    w13 = jnp.dot(x, w13_ref[...], preferred_element_type=jnp.float32)
    w13 = w13 + jnp.dot(xa_ref[...].astype(x.dtype), b13_ref[...],
                        preferred_element_type=jnp.float32)
    th = w13.shape[-1] // 2
    w1x = w13[:, :th]
    w3x = w13[:, th:]
    # silu(w1x) * w3x in f32 (exp -> EUP, multiplies -> VPU).
    h = (w1x * jax.nn.sigmoid(w1x)) * w3x
    hc = h.astype(x.dtype)

    # Stream the down-projection: base-W2 and LoRA-A2 partials fused into a
    # single wide matmul (weights were packed as [W2^T | A2^T] per tile).
    acc_ref[...] += jnp.dot(hc, w2a2_ref[...],
                            preferred_element_type=jnp.float32)

    @pl.when(j == last)
    def _():
        acc = acc_ref[...]
        out = acc[:, :dim] + jnp.dot(acc[:, dim:].astype(x.dtype), b2_ref[...],
                                     preferred_element_type=jnp.float32)
        out_ref[...] = out.astype(out_ref.dtype)


def prepare_params(params, *, th, rp):
    """One-time weight layout prep (call once at load time, NOT per forward).

    Returns a dict of packed operands:
      w13  : (dim, 2*hidden)    per hidden tile j, columns = [W1_j^T | W3_j^T]
      a13  : (dim, 2*rp)        [A1^T | A3^T], rank zero-padded to rp
      b13  : (2*rp, 2*hidden)   per-tile block-diag [[B1_j^T, 0], [0, B3_j^T]]
      w2a2 : (hidden, dim+rp)   [W2^T | A2^T], A2 rank-padded
      b2   : (rp, dim)          B2^T rank-padded
    """
    w1t = params["w1"].T            # (dim, hidden)
    w3t = params["w3"].T            # (dim, hidden)
    w2t = params["w2"].T            # (hidden, dim)
    dim, hidden = w1t.shape
    r = params["lora_a_w1"].shape[0]
    assert hidden % th == 0, "hidden_dim must be divisible by the hidden tile"
    assert rp >= r
    nh = hidden // th

    # Interleave W1/W3 per hidden tile: tile j -> [W1 tile | W3 tile].
    w13 = jnp.concatenate(
        [w1t.reshape(dim, nh, 1, th), w3t.reshape(dim, nh, 1, th)], axis=2
    ).reshape(dim, 2 * hidden)

    # Stacked, rank-padded LoRA A for the gate/up path.
    pad_cols = lambda a: jnp.pad(a, ((0, 0), (0, rp - r)))
    a13 = jnp.concatenate(
        [pad_cols(params["lora_a_w1"].T), pad_cols(params["lora_a_w3"].T)],
        axis=1)                                                   # (dim, 2*rp)

    # Block-diagonal LoRA B, packed per hidden tile.
    b1t = jnp.pad(params["lora_b_w1"].T, ((0, rp - r), (0, 0)))   # (rp, hidden)
    b3t = jnp.pad(params["lora_b_w3"].T, ((0, rp - r), (0, 0)))
    b13 = jnp.zeros((2 * rp, nh, 2, th), dtype=b1t.dtype)
    b13 = b13.at[:rp, :, 0, :].set(b1t.reshape(rp, nh, th))
    b13 = b13.at[rp:, :, 1, :].set(b3t.reshape(rp, nh, th))
    b13 = b13.reshape(2 * rp, 2 * hidden)

    # Down-projection weights: base W2^T and rank-padded A2^T side-by-side so
    # the per-tile accumulation is a single wide matmul.
    a2 = jnp.pad(params["lora_a_w2"].T, ((0, 0), (0, rp - r)))    # (hidden, rp)
    w2a2 = jnp.concatenate([w2t, a2], axis=1)                     # (hidden, dim+rp)
    b2 = jnp.pad(params["lora_b_w2"].T, ((0, rp - r), (0, 0)))    # (rp, dim)

    return {"w13": w13, "a13": a13, "b13": b13, "w2a2": w2a2, "b2": b2}


@functools.partial(jax.jit, static_argnames=("tm", "th"))
def lora_ffn_forward(x, packed, *, tm=128, th=128):
    """x: (batch, seq, dim). packed: output of prepare_params()."""
    b, s, dim = x.shape
    t = b * s
    t_pad = _round_up(t, tm)
    x2 = x.reshape(t, dim)
    if t_pad != t:
        x2 = jnp.pad(x2, ((0, t_pad - t), (0, 0)))

    hidden = packed["w2a2"].shape[0]
    rp = packed["b2"].shape[0]
    assert hidden % th == 0
    nt = t_pad // tm
    nh = hidden // th

    out2 = pl.pallas_call(
        _lora_ffn_kernel,
        out_shape=jax.ShapeDtypeStruct((t_pad, dim), x.dtype),
        grid_spec=pltpu.PrefetchScalarGridSpec(
            num_scalar_prefetch=0,
            grid=(nt, nh),
            in_specs=[
                pl.BlockSpec((tm, dim), lambda i, j: (i, 0)),          # x tile
                pl.BlockSpec((dim, 2 * th), lambda i, j: (0, j)),      # [W1|W3] tile
                pl.BlockSpec((dim, 2 * rp), lambda i, j: (0, 0)),      # [A1|A3]
                pl.BlockSpec((2 * rp, 2 * th), lambda i, j: (0, j)),   # block-diag [B1,B3] tile
                pl.BlockSpec((th, dim + rp), lambda i, j: (j, 0)),     # [W2^T | A2^T] tile
                pl.BlockSpec((rp, dim), lambda i, j: (0, 0)),          # B2^T
            ],
            out_specs=pl.BlockSpec((tm, dim), lambda i, j: (i, 0)),
            scratch_shapes=[
                pltpu.VMEM((tm, dim + rp), jnp.float32),   # acc: [h@W2^T | h@A2^T]
                pltpu.VMEM((tm, 2 * rp), jnp.float32),     # xa: x @ [A1|A3]
            ],
        ),
        compiler_params=pltpu.CompilerParams(
            dimension_semantics=("parallel", "arbitrary"),
            vmem_limit_bytes=64 * 1024 * 1024,
        ),
    )(x2, packed["w13"], packed["a13"], packed["b13"],
      packed["w2a2"], packed["b2"])

    return out2[:t].reshape(b, s, dim)


def _reference(x, p):
    """Pure-JAX reference matching the PyTorch forward."""
    xf = x.astype(jnp.float32)
    w1_x = xf @ p["w1"].T + (xf @ p["lora_a_w1"].T) @ p["lora_b_w1"].T
    w3_x = xf @ p["w3"].T + (xf @ p["lora_a_w3"].T) @ p["lora_b_w3"].T
    h = jax.nn.silu(w1_x) * w3_x
    out = h @ p["w2"].T + (h @ p["lora_a_w2"].T) @ p["lora_b_w2"].T
    return out.astype(x.dtype)


def _llama_hidden_dim(dim, ffn_dim_multiplier=1.3, multiple_of=32):
    hidden = int(2 * (4 * dim) / 3)
    hidden = int(ffn_dim_multiplier * hidden)
    hidden = multiple_of * ((hidden + multiple_of - 1) // multiple_of)
    return hidden


if __name__ == "__main__":
    # Small shapes consistent with the module: dim=32 -> hidden_dim=128, r=8.
    batch, seq, dim, r = 2, 8, 32, 8
    hidden = _llama_hidden_dim(dim)  # 128

    key = jax.random.PRNGKey(0)
    ks = jax.random.split(key, 10)
    scale = 0.05
    # PyTorch nn.Linear weight layout: (out_features, in_features).
    # NOTE: the real module zero-inits lora_b_*; we use small random values so
    # the LoRA path is exercised (semantics of forward are unchanged).
    params = {
        "w1":        scale * jax.random.normal(ks[0], (hidden, dim), jnp.float32),
        "w2":        scale * jax.random.normal(ks[1], (dim, hidden), jnp.float32),
        "w3":        scale * jax.random.normal(ks[2], (hidden, dim), jnp.float32),
        "lora_a_w1": scale * jax.random.normal(ks[3], (r, dim), jnp.float32),
        "lora_b_w1": scale * jax.random.normal(ks[4], (hidden, r), jnp.float32),
        "lora_a_w2": scale * jax.random.normal(ks[5], (r, hidden), jnp.float32),
        "lora_b_w2": scale * jax.random.normal(ks[6], (dim, r), jnp.float32),
        "lora_a_w3": scale * jax.random.normal(ks[7], (r, dim), jnp.float32),
        "lora_b_w3": scale * jax.random.normal(ks[8], (hidden, r), jnp.float32),
    }

    x = jax.random.normal(ks[9], (batch, seq, dim), jnp.float32)

    # Tile choices: tm=128 (MXU-friendly M).  Hidden tile th: <=256 on v7x
    # (64 MiB VMEM at dim=8192), 512-1024 on v6e/v5e (128 MiB VMEM).  LoRA
    # rank padded so 2*rp is lane-dense (multiple of 128).
    th = min(hidden, 512)
    rp = _round_up(r, 64)

    packed = prepare_params(params, th=th, rp=rp)   # one-time, outside jit

    out = lora_ffn_forward(x, packed, tm=128, th=th)
    out = jax.block_until_ready(out)

    ref = _reference(x, params)
    assert out.shape == (batch, seq, dim)
    assert jnp.allclose(out, ref, atol=2e-4, rtol=2e-4), "mismatch vs reference"

    print("KERNEL_OK")
</pallas_src>

<mosaic_0001>
module attributes {stable_mosaic.version = 11 : i64} {
  func.func @_lora_ffn_kernel(%arg0: i32, %arg1: i32, %arg2: memref<128x32xf32, #tpu.memory_space<vmem>>, %arg3: memref<32x256xf32, #tpu.memory_space<vmem>>, %arg4: memref<32x128xf32, #tpu.memory_space<vmem>>, %arg5: memref<128x256xf32, #tpu.memory_space<vmem>>, %arg6: memref<128x96xf32, #tpu.memory_space<vmem>>, %arg7: memref<64x32xf32, #tpu.memory_space<vmem>>, %arg8: memref<128x32xf32, #tpu.memory_space<vmem>>, %arg9: memref<128x96xf32, #tpu.memory_space<vmem>>, %arg10: memref<128x128xf32, #tpu.memory_space<vmem>>) attributes {dimension_semantics = [#tpu.dimension_semantics<parallel>, #tpu.dimension_semantics<arbitrary>], iteration_bounds = array<i64: 1, 1>, scalar_prefetch = 0 : i64, scratch_operands = 2 : i64, tpu.core_type = #tpu.core_type<tc>, window_params = [{transform_indices = @transform_0, window_bounds = array<i64: 128, 32>}, {transform_indices = @transform_1, window_bounds = array<i64: 32, 256>}, {pipeline_mode = #tpu.pipeline_mode<synchronous>, transform_indices = @transform_2, window_bounds = array<i64: 32, 128>}, {transform_indices = @transform_3, window_bounds = array<i64: 128, 256>}, {transform_indices = @transform_4, window_bounds = array<i64: 128, 96>}, {pipeline_mode = #tpu.pipeline_mode<synchronous>, transform_indices = @transform_5, window_bounds = array<i64: 64, 32>}, {transform_indices = @transform_6, window_bounds = array<i64: 128, 32>}]} {
    %c0 = arith.constant 0 : index
    %c0_0 = arith.constant 0 : index
    %0 = vector.load %arg2[%c0, %c0_0] : memref<128x32xf32, #tpu.memory_space<vmem>>, vector<128x32xf32>
    %c0_i32 = arith.constant 0 : i32
    %1 = arith.cmpi eq, %arg1, %c0_i32 : i32
    %2 = arith.extui %1 : i1 to i32
    %c0_i32_1 = arith.constant 0 : i32
    %3 = arith.cmpi ne, %2, %c0_i32_1 : i32
    scf.if %3 {
      %cst_19 = arith.constant 0.000000e+00 : f32
      %27 = vector.broadcast %cst_19 : f32 to vector<128x96xf32>
      %c0_20 = arith.constant 0 : index
      %c0_21 = arith.constant 0 : index
      %28 = vector.load %arg9[%c0_20, %c0_21] : memref<128x96xf32, #tpu.memory_space<vmem>>, vector<128x96xf32>
      tpu.vector_store %arg9[%c0_20, %c0_21], %27 {strides = array<i32>} : memref<128x96xf32, #tpu.memory_space<vmem>>, vector<128x96xf32>,
      %c0_22 = arith.constant 0 : index
      %c0_23 = arith.constant 0 : index
      %29 = vector.load %arg4[%c0_22, %c0_23] : memref<32x128xf32, #tpu.memory_space<vmem>>, vector<32x128xf32>
      %cst_24 = arith.constant dense<0.000000e+00> : vector<128x128xf32>
      %30 = tpu.matmul %0, %29, %cst_24 {dimension_numbers = #tpu.dot_dimension_numbers<[1], [0], [0], [1], [0, 0, 1, 1], [], []>} : vector<128x32xf32>, vector<32x128xf32>, vector<128x128xf32> -> vector<128x128xf32>
      %c0_25 = arith.constant 0 : index
      %c0_26 = arith.constant 0 : index
      %31 = vector.load %arg10[%c0_25, %c0_26] : memref<128x128xf32, #tpu.memory_space<vmem>>, vector<128x128xf32>
      tpu.vector_store %arg10[%c0_25, %c0_26], %30 {strides = array<i32>} : memref<128x128xf32, #tpu.memory_space<vmem>>, vector<128x128xf32>,
    } else {
    }
    %c0_2 = arith.constant 0 : index
    %c0_3 = arith.constant 0 : index
    %4 = vector.load %arg3[%c0_2, %c0_3] : memref<32x256xf32, #tpu.memory_space<vmem>>, vector<32x256xf32>
    %cst = arith.constant dense<0.000000e+00> : vector<128x256xf32>
    %5 = tpu.matmul %0, %4, %cst {dimension_numbers = #tpu.dot_dimension_numbers<[1], [0], [0], [1], [0, 0, 1, 1], [], []>} : vector<128x32xf32>, vector<32x256xf32>, vector<128x256xf32> -> vector<128x256xf32>
    %c0_4 = arith.constant 0 : index
    %c0_5 = arith.constant 0 : index
    %6 = vector.load %arg10[%c0_4, %c0_5] : memref<128x128xf32, #tpu.memory_space<vmem>>, vector<128x128xf32>
    %c0_6 = arith.constant 0 : index
    %c0_7 = arith.constant 0 : index
    %7 = vector.load %arg5[%c0_6, %c0_7] : memref<128x256xf32, #tpu.memory_space<vmem>>, vector<128x256xf32>
    %cst_8 = arith.constant dense<0.000000e+00> : vector<128x256xf32>
    %8 = tpu.matmul %6, %7, %cst_8 {dimension_numbers = #tpu.dot_dimension_numbers<[1], [0], [0], [1], [0, 0, 1, 1], [], []>} : vector<128x128xf32>, vector<128x256xf32>, vector<128x256xf32> -> vector<128x256xf32>
    %9 = arith.addf %5, %8 : vector<128x256xf32>
    %10 = vector.extract_strided_slice %9 {offsets = [0, 0], sizes = [128, 128], strides = [1, 1]} : vector<128x256xf32> to vector<128x128xf32>
    %11 = vector.extract_strided_slice %9 {offsets = [0, 128], sizes = [128, 128], strides = [1, 1]} : vector<128x256xf32> to vector<128x128xf32>
    %12 = arith.negf %10 : vector<128x128xf32>
    %13 = math.exp %12 : vector<128x128xf32>
    %cst_9 = arith.constant 1.000000e+00 : f32
    %14 = vector.broadcast %cst_9 : f32 to vector<128x128xf32>
    %15 = arith.addf %14, %13 : vector<128x128xf32>
    %16 = arith.divf %14, %15 : vector<128x128xf32>
    %17 = arith.mulf %10, %16 : vector<128x128xf32>
    %18 = arith.mulf %17, %11 : vector<128x128xf32>
    %c0_10 = arith.constant 0 : index
    %c0_11 = arith.constant 0 : index
    %19 = vector.load %arg9[%c0_10, %c0_11] : memref<128x96xf32, #tpu.memory_space<vmem>>, vector<128x96xf32>
    %c0_12 = arith.constant 0 : index
    %c0_13 = arith.constant 0 : index
    %20 = vector.load %arg6[%c0_12, %c0_13] : memref<128x96xf32, #tpu.memory_space<vmem>>, vector<128x96xf32>
    %cst_14 = arith.constant dense<0.000000e+00> : vector<128x96xf32>
    %21 = tpu.matmul %18, %20, %cst_14 {dimension_numbers = #tpu.dot_dimension_numbers<[1], [0], [0], [1], [0, 0, 1, 1], [], []>} : vector<128x128xf32>, vector<128x96xf32>, vector<128x96xf32> -> vector<128x96xf32>
    %22 = arith.addf %19, %21 : vector<128x96xf32>
    %c0_15 = arith.constant 0 : index
    %c0_16 = arith.constant 0 : index
    %23 = vector.load %arg9[%c0_15, %c0_16] : memref<128x96xf32, #tpu.memory_space<vmem>>, vector<128x96xf32>
    tpu.vector_store %arg9[%c0_15, %c0_16], %22 {strides = array<i32>} : memref<128x96xf32, #tpu.memory_space<vmem>>, vector<128x96xf32>,
    %c0_i32_17 = arith.constant 0 : i32
    %24 = arith.cmpi eq, %arg1, %c0_i32_17 : i32
    %25 = arith.extui %24 : i1 to i32
    %c0_i32_18 = arith.constant 0 : i32
    %26 = arith.cmpi ne, %25, %c0_i32_18 : i32
    scf.if %26 {
      %c0_19 = arith.constant 0 : index
      %c0_20 = arith.constant 0 : index
      %27 = vector.load %arg9[%c0_19, %c0_20] : memref<128x96xf32, #tpu.memory_space<vmem>>, vector<128x96xf32>
      %28 = vector.extract_strided_slice %27 {offsets = [0, 0], sizes = [128, 32], strides = [1, 1]} : vector<128x96xf32> to vector<128x32xf32>
      %29 = vector.extract_strided_slice %27 {offsets = [0, 32], sizes = [128, 64], strides = [1, 1]} : vector<128x96xf32> to vector<128x64xf32>
      %c0_21 = arith.constant 0 : index
      %c0_22 = arith.constant 0 : index
      %30 = vector.load %arg7[%c0_21, %c0_22] : memref<64x32xf32, #tpu.memory_space<vmem>>, vector<64x32xf32>
      %cst_23 = arith.constant dense<0.000000e+00> : vector<128x32xf32>
      %31 = tpu.matmul %29, %30, %cst_23 {dimension_numbers = #tpu.dot_dimension_numbers<[1], [0], [0], [1], [0, 0, 1, 1], [], []>} : vector<128x64xf32>, vector<64x32xf32>, vector<128x32xf32> -> vector<128x32xf32>
      %32 = arith.addf %28, %31 : vector<128x32xf32>
      %c0_24 = arith.constant 0 : index
      %c0_25 = arith.constant 0 : index
      %33 = vector.load %arg8[%c0_24, %c0_25] : memref<128x32xf32, #tpu.memory_space<vmem>>, vector<128x32xf32>
      tpu.vector_store %arg8[%c0_24, %c0_25], %32 {strides = array<i32>} : memref<128x32xf32, #tpu.memory_space<vmem>>, vector<128x32xf32>,
    } else {
    }
    return
  }
  func.func @transform_0(%arg0: i32, %arg1: i32) -> (i32, i32) {
    %c0_i32 = arith.constant 0 : i32
    %c0_i32_0 = arith.constant 0 : i32
    return %arg0, %c0_i32 : i32, i32
  }
  func.func @transform_1(%arg0: i32, %arg1: i32) -> (i32, i32) {
    %c0_i32 = arith.constant 0 : i32
    %c0_i32_0 = arith.constant 0 : i32
    return %c0_i32, %arg1 : i32, i32
  }
  func.func @transform_2(%arg0: i32, %arg1: i32) -> (i32, i32) {
    %c0_i32 = arith.constant 0 : i32
    %c0_i32_0 = arith.constant 0 : i32
    %c0_i32_1 = arith.constant 0 : i32
    return %c0_i32, %c0_i32_0 : i32, i32
  }
  func.func @transform_3(%arg0: i32, %arg1: i32) -> (i32, i32) {
    %c0_i32 = arith.constant 0 : i32
    %c0_i32_0 = arith.constant 0 : i32
    return %c0_i32, %arg1 : i32, i32
  }
  func.func @transform_4(%arg0: i32, %arg1: i32) -> (i32, i32) {
    %c0_i32 = arith.constant 0 : i32
    %c0_i32_0 = arith.constant 0 : i32
    return %arg1, %c0_i32 : i32, i32
  }
  func.func @transform_5(%arg0: i32, %arg1: i32) -> (i32, i32) {
    %c0_i32 = arith.constant 0 : i32
    %c0_i32_0 = arith.constant 0 : i32
    %c0_i32_1 = arith.constant 0 : i32
    return %c0_i32, %c0_i32_0 : i32, i32
  }
  func.func @transform_6(%arg0: i32, %arg1: i32) -> (i32, i32) {
    %c0_i32 = arith.constant 0 : i32
    %c0_i32_0 = arith.constant 0 : i32
    return %arg0, %c0_i32 : i32, i32
  }
}

</mosaic_0001>

<bundles_post_ra>
// kernel: lora_ffn_forward.1
= control target key start
LH: loop header
LB: loop body
LE: loop exit
PB: predicated region body
PF: predicated region fallthrough
CT: control target
= control target key end

     0   :  { %vm64_vm0 = vcmask 261120   ;;  %v1678_v58 = vmov 0.0   ;;  %vm43_vm1 = vcmask 785408   ;;  %vm1114_vm2 = vcmask 523264   ;;  %s2445_s2 = inlined_call_operand.vmem [shape: f32[32,128], index: 2, kind: input, shape index: {}]   ;;  %s2446_s0 = inlined_call_operand.vmem [shape: f32[128,32], index: 0, kind: input, shape index: {}]   ;;  %s2447_s1 = inlined_call_operand.vmem [shape: f32[32,256], index: 1, kind: input, shape index: {}]   ;;  %s2448_s3 = inlined_call_operand.vmem [shape: f32[128,256], index: 3, kind: input, shape index: {}]   ;;  %s2449_s4 = inlined_call_operand.vmem [shape: f32[128,96], index: 4, kind: input, shape index: {}]   ;;  %s2450_s5 = inlined_call_operand.vmem [shape: f32[64,32], index: 5, kind: input, shape index: {}]   ;;  %s2451_s6 = inlined_call_operand.vmem [shape: f32[128,32], index: 6, kind: output, shape index: {}]  }
   0x1   :  { %v63_v0 = vld [vmem:[%s2445_s2 + $0x18] sm:$0xff]  ;;  %v62_v1 = vld [vmem:[%s2445_s2 + $0x10] sm:$0xff]  ;;  %v1724_v2 = vld [vmem:[%s2446_s0] sm:$0xff]  ;;  %394 = vmatprep.mubr.f32.mxu1 %v1678_v58  ;;  %45 = vst.msk [vmem:[#allocation2 + $0x8] sm:$0xff] %vm43_vm1, %v1678_v58 }
   0x2   :  { %1468 = vmatprep.subr.mxu0 %v63_v0  ;;  %v61_v3 = vld [vmem:[%s2445_s2 + $0x8] sm:$0xff]  ;;  %1476 = vmatprep.mubr.msk.f32.mxu0 %vm64_vm0, %v1724_v2  ;;  %v60_v4 = vld [vmem:[%s2445_s2] sm:$0xff]  ;;  %v281_v6 = vld [vmem:[%s2447_s1 + $0x38] sm:$0xff]  ;;  %44 = vst.msk [vmem:[#allocation2] sm:$0xff] %vm43_vm1, %v1678_v58 }
   0x3   :  { %1469 = vmatpush3.msra.mxu0 %v63_v0  ;;  %v1737_v5 = vld [vmem:[%s2446_s0 + $0x8] sm:$0xff]  ;;  %v1745_v7 = vld [vmem:[%s2446_s0 + $0x10] sm:$0xff]  ;;  %v329_v8 = vld [vmem:[%s2448_s3 + $0xf8] sm:$0xff]  ;;  %46 = vst.msk [vmem:[#allocation2 + $0x10] sm:$0xff] %vm43_vm1, %v1678_v58 }
   0x4   :  { %1470 = vmatprep.subr.mxu0 %v62_v1  ;;  %v280_v9 = vld [vmem:[%s2447_s1 + $0x30] sm:$0xff]  ;;  %330 = vmatprep.subr.mxu1 %v329_v8  ;;  %v1761_v11 = vld [vmem:[%s2446_s0 + $0x18] sm:$0xff]  ;;  %v327_v12 = vld [vmem:[%s2448_s3 + $0xe8] sm:$0xff]  ;;  %47 = vst.msk [vmem:[#allocation2 + $0x18] sm:$0xff] %vm43_vm1, %v1678_v58 }
   0x5   :  { %1471 = vmatpush3.msra.mxu0 %v62_v1  ;;  %v328_v10 = vld [vmem:[%s2448_s3 + $0xf0] sm:$0xff]  ;;  %v326_v13 = vld [vmem:[%s2448_s3 + $0xe0] sm:$0xff]  ;;  %v279_v14 = vld [vmem:[%s2447_s1 + $0x28] sm:$0xff]  ;;  %48 = vst.msk [vmem:[#allocation2 + $0x20] sm:$0xff] %vm43_vm1, %v1678_v58 }
   0x6   :  { %1472 = vmatprep.subr.mxu0 %v61_v3  ;;  %v278_v15 = vld [vmem:[%s2447_s1 + $0x20] sm:$0xff]  ;;  %331 = vmatpush1.msra.mxu1 %v328_v10  ;;  %v325_v17 = vld [vmem:[%s2448_s3 + $0xd8] sm:$0xff]  ;;  %v324_v18 = vld [vmem:[%s2448_s3 + $0xd0] sm:$0xff]  ;;  %49 = vst.msk [vmem:[#allocation2 + $0x28] sm:$0xff] %vm43_vm1, %v1678_v58 }
   0x7   :  { %1473 = vmatpush3.msra.mxu0 %v61_v3  ;;  %v1780_v16 = vld [vmem:[%s2446_s0 + $0x20] sm:$0xff]  ;;  %332 = vmatprep.subr.mxu1 %v327_v12  ;;  %v323_v19 = vld [vmem:[%s2448_s3 + $0xc8] sm:$0xff]  ;;  %v277_v20 = vld [vmem:[%s2447_s1 + $0x18] sm:$0xff]  ;;  %50 = vst.msk [vmem:[#allocation2 + $0x30] sm:$0xff] %vm43_vm1, %v1678_v58 }
   0x8   :  { %1474 = vmatprep.subr.mxu0 %v60_v4  ;;  %333 = vmatpush1.msra.mxu1 %v326_v13  ;;  %v1801_v21 = vld [vmem:[%s2446_s0 + $0x28] sm:$0xff]  ;;  %v322_v22 = vld [vmem:[%s2448_s3 + $0xc0] sm:$0xff]  ;;  %v276_v23 = vld [vmem:[%s2447_s1 + $0x10] sm:$0xff]  ;;  %51 = vst.msk [vmem:[#allocation2 + $0x38] sm:$0xff] %vm43_vm1, %v1678_v58 }
   0x9   :  { %1475 = vmatpush3.msra.mxu0 %v60_v4  ;;  %334 = vmatprep.subr.mxu1 %v325_v17  ;;  %v1812_v24 = vld [vmem:[%s2446_s0 + $0x30] sm:$0xff]  ;;  %v321_v25 = vld [vmem:[%s2448_s3 + $0xb8] sm:$0xff]  ;;  %v275_v27 = vld [vmem:[%s2447_s1 + $0x8] sm:$0xff]  ;;  %52 = vst.msk [vmem:[#allocation2 + $0x40] sm:$0xff] %vm43_vm1, %v1678_v58 }
   0xa   :  { %1477 = vmatmul.mubr.msk.f32.vlgmr.msra.gmra.mxu0 %vm64_vm0, %v1737_v5  ;;  %564 = vmatprep.subr.mxu0 %v281_v6  ;;  %v320_v26 = vld [vmem:[%s2448_s3 + $0xb0] sm:$0xff]  ;;  %v319_v28 = vld [vmem:[%s2448_s3 + $0xa8] sm:$0xff]  ;;  %v274_v29 = vld [vmem:[%s2447_s1] sm:$0xff]  ;;  %53 = vst.msk [vmem:[#allocation2 + $0x48] sm:$0xff] %vm43_vm1, %v1678_v58 }
   0xb   :  { %1479 = vmatprep.mubr.msk.f32.mxu0 %vm64_vm0, %v1745_v7  ;;  %565 = vmatpush1.msra.mxu0 %v280_v9  ;;  %v1836_v30 = vld [vmem:[%s2446_s0 + $0x38] sm:$0xff]  ;;  %v318_v31 = vld [vmem:[%s2448_s3 + $0xa0] sm:$0xff]  ;;  %v316_v34 = vld [vmem:[%s2448_s3 + $0x90] sm:$0xff]  ;;  %54 = vst.msk [vmem:[#allocation2 + $0x50] sm:$0xff] %vm43_vm1, %v1678_v58 }
   0xc   :  { %566 = vmatprep.subr.mxu0 %v279_v14  ;;  %335 = vmatpush1.msra.mxu1 %v324_v18  ;;  %v1844_v32 = vld [vmem:[%s2446_s0 + $0x40] sm:$0xff]  ;;  %v317_v33 = vld [vmem:[%s2448_s3 + $0x98] sm:$0xff]  ;;  %v315_v35 = vld [vmem:[%s2448_s3 + $0x88] sm:$0xff]  ;;  %55 = vst.msk [vmem:[#allocation2 + $0x58] sm:$0xff] %vm43_vm1, %v1678_v58 }
   0xd   :  { %567 = vmatpush1.msra.mxu0 %v278_v15  ;;  %336 = vmatprep.subr.mxu1 %v323_v19  ;;  %v1862_v36 = vld [vmem:[%s2446_s0 + $0x48] sm:$0xff]  ;;  %v314_v37 = vld [vmem:[%s2448_s3 + $0x80] sm:$0xff]  ;;  %v1870_v38 = vld [vmem:[%s2446_s0 + $0x50] sm:$0xff]  ;;  %56 = vst.msk [vmem:[#allocation2 + $0x60] sm:$0xff] %vm43_vm1, %v1678_v58 }
   0xe   :  { %1480 = vmatmul.mubr.msk.f32.gmra.mxu0 %vm64_vm0, %v1761_v11  ;;  %568 = vmatprep.subr.mxu0 %v277_v20  ;;  %v313_v39 = vld [vmem:[%s2448_s3 + $0x78] sm:$0xff]  ;;  %v312_v40 = vld [vmem:[%s2448_s3 + $0x70] sm:$0xff]  ;;  %v311_v41 = vld [vmem:[%s2448_s3 + $0x68] sm:$0xff]  ;;  %57 = vst.msk [vmem:[#allocation2 + $0x68] sm:$0xff] %vm43_vm1, %v1678_v58 }
   0xf   :  { %1482 = vmatprep.mubr.msk.f32.mxu0 %vm64_vm0, %v1780_v16  ;;  %569 = vmatpush1.msra.mxu0 %v276_v23  ;;  %v1888_v42 = vld [vmem:[%s2446_s0 + $0x58] sm:$0xff]  ;;  %v310_v43 = vld [vmem:[%s2448_s3 + $0x60] sm:$0xff]  ;;  %v308_v46 = vld [vmem:[%s2448_s3 + $0x50] sm:$0xff]  ;;  %58 = vst.msk [vmem:[#allocation2 + $0x70] sm:$0xff] %vm43_vm1, %v1678_v58 }
  0x10   :  { %337 = vmatpush1.msra.mxu1 %v322_v22  ;;  %570 = vmatprep.subr.mxu0 %v275_v27  ;;  %v1896_v44 = vld [vmem:[%s2446_s0 + $0x60] sm:$0xff]  ;;  %v309_v45 = vld [vmem:[%s2448_s3 + $0x58] sm:$0xff]  ;;  %v307_v47 = vld [vmem:[%s2448_s3 + $0x48] sm:$0xff]  ;;  %59 = vst.msk [vmem:[#allocation2 + $0x78] sm:$0xff] %vm43_vm1, %v1678_v58 }
  0x11   :  { %338 = vmatprep.subr.mxu1 %v321_v25  ;;  %571 = vmatpush1.msra.mxu0 %v274_v29  ;;  %v36_v48 = vld [vmem:[%s2446_s0 + $0x68] sm:$0xff]  ;;  %v306_v49 = vld [vmem:[%s2448_s3 + $0x40] sm:$0xff]  ;;  %v37_v50 = vld [vmem:[%s2446_s0 + $0x70] sm:$0xff] }
  0x12   :  { %1483 = vmatmul.mubr.msk.f32.gmra.mxu0 %vm64_vm0, %v1801_v21  ;;  %339 = vmatpush1.msra.mxu1 %v320_v26  ;;  %v305_v51 = vld [vmem:[%s2448_s3 + $0x38] sm:$0xff]  ;;  %v304_v52 = vld [vmem:[%s2448_s3 + $0x30] sm:$0xff]  ;;  %v303_v53 = vld [vmem:[%s2448_s3 + $0x28] sm:$0xff] }
  0x13   :  { %1485 = vmatprep.mubr.msk.f32.mxu0 %vm64_vm0, %v1812_v24  ;;  %340 = vmatprep.subr.mxu1 %v319_v28  ;;  %v38_v54 = vld [vmem:[%s2446_s0 + $0x78] sm:$0xff]  ;;  %v302_v55 = vld [vmem:[%s2448_s3 + $0x20] sm:$0xff]  ;;  %v300_v57 = vld [vmem:[%s2448_s3 + $0x10] sm:$0xff] }
  0x14   :  { %341 = vmatpush1.msra.mxu1 %v318_v31  ;;  %v301_v56 = vld [vmem:[%s2448_s3 + $0x18] sm:$0xff]  ;;  %v299_v59 = vld [vmem:[%s2448_s3 + $0x8] sm:$0xff]  ;;  %v298_v60 = vld [vmem:[%s2448_s3] sm:$0xff] }
  0x15   :  { %342 = vmatprep.subr.mxu1 %v317_v33  ;;  %v860_v13 = vld [vmem:[%s2449_s4 + $0x78] sm:$0xff]  ;;  %v859_v14 = vld [vmem:[%s2449_s4 + $0x70] sm:$0xff]  ;;  %v858_v15 = vld [vmem:[%s2449_s4 + $0x68] sm:$0xff] }
  0x16   :  { %1486 = vmatmul.mubr.msk.f32.gmra.mxu0 %vm64_vm0, %v1836_v30  ;;  %343 = vmatpush1.msra.mxu1 %v316_v34  ;;  %v856_v17 = vld [vmem:[%s2449_s4 + $0x58] sm:$0xff]  ;;  %v855_v18 = vld [vmem:[%s2449_s4 + $0x50] sm:$0xff]  ;;  %v854_v19 = vld [vmem:[%s2449_s4 + $0x48] sm:$0xff] }
  0x17   :  { %1488 = vmatprep.mubr.msk.f32.mxu0 %vm64_vm0, %v1844_v32  ;;  %344 = vmatprep.subr.mxu1 %v315_v35  ;;  %v853_v20 = vld [vmem:[%s2449_s4 + $0x40] sm:$0xff]  ;;  %v851_v22 = vld [vmem:[%s2449_s4 + $0x30] sm:$0xff]  ;;  %v850_v23 = vld [vmem:[%s2449_s4 + $0x28] sm:$0xff] }
  0x18   :  { %345 = vmatpush1.msra.mxu1 %v314_v37  ;;  %v848_v25 = vld [vmem:[%s2449_s4 + $0x18] sm:$0xff]  ;;  %v847_v26 = vld [vmem:[%s2449_s4 + $0x10] sm:$0xff]  ;;  %v846_v27 = vld [vmem:[%s2449_s4 + $0x8] sm:$0xff] }
  0x19   :  { %346 = vmatprep.subr.mxu1 %v313_v39  ;;  %v845_v28 = vld [vmem:[%s2449_s4] sm:$0xff] }
  0x1a   :  { %1489 = vmatmul.mubr.msk.f32.gmra.mxu0 %vm64_vm0, %v1862_v36  ;;  %347 = vmatpush1.msra.mxu1 %v312_v40 }
  0x1b   :  { %1491 = vmatprep.mubr.msk.f32.mxu0 %vm64_vm0, %v1870_v38  ;;  %348 = vmatprep.subr.mxu1 %v311_v41 }
  0x1c   :  { %349 = vmatpush1.msra.mxu1 %v310_v43 }
  0x1d   :  { %350 = vmatprep.subr.mxu1 %v309_v45 }
  0x1e   :  { %1492 = vmatmul.mubr.msk.f32.gmra.mxu0 %vm64_vm0, %v1888_v42  ;;  %351 = vmatpush1.msra.mxu1 %v308_v46 }
  0x1f   :  { %1494 = vmatprep.mubr.msk.f32.mxu0 %vm64_vm0, %v1896_v44  ;;  %352 = vmatprep.subr.mxu1 %v307_v47 }
  0x20   :  { %353 = vmatpush1.msra.mxu1 %v306_v49 }
  0x21   :  { %354 = vmatprep.subr.mxu1 %v305_v51 }
  0x22   :  { %1495 = vmatmul.mubr.msk.f32.gmra.mxu0 %vm64_vm0, %v36_v48  ;;  %355 = vmatpush1.msra.mxu1 %v304_v52 }
  0x23   :  { %1497 = vmatprep.mubr.msk.f32.mxu0 %vm64_vm0, %v37_v50  ;;  %356 = vmatprep.subr.mxu1 %v303_v53 }
  0x24   :  { %357 = vmatpush1.msra.mxu1 %v302_v55 }
  0x25   :  { %358 = vmatprep.subr.mxu1 %v301_v56 }
  0x26   :  { %1498 = vmatmul.mubr.msk.f32.gmra.mxu0 %vm64_vm0, %v38_v54  ;;  %359 = vmatpush1.msra.mxu1 %v300_v57 }
  0x27   :  { %604 = vmatprep.mubr.f32.mxu0 %v1678_v58  ;;  %360 = vmatprep.subr.mxu1 %v299_v59 }
  0x28   :  { %361 = vmatpush1.msra.mxu1 %v298_v60 }
  0x29   :  { %1500 = vmatprep.subr.mxu1 %v860_v13 }
  0x2a   :  { %1344 = vmatmul.mubr.msk.f32.vlgmr.msra.gmra.mxu0 %vm64_vm0, %v1724_v2 }
  0x2b   :  { %610 = vmatprep.mubr.f32.mxu0 %v1678_v58 }
  0x2e   :  { %1345 = vmatmul.mubr.msk.f32.gmra.mxu0 %vm64_vm0, %v1737_v5 }
  0x2f   :  { %616 = vmatprep.mubr.f32.mxu0 %v1678_v58 }
  0x32   :  { %1346 = vmatmul.mubr.msk.f32.gmra.mxu0 %vm64_vm0, %v1745_v7 }
  0x33   :  { %622 = vmatprep.mubr.f32.mxu0 %v1678_v58 }
  0x36   :  { %1347 = vmatmul.mubr.msk.f32.gmra.mxu0 %vm64_vm0, %v1761_v11 }
  0x37   :  { %628 = vmatprep.mubr.f32.mxu0 %v1678_v58 }
  0x3a   :  { %1348 = vmatmul.mubr.msk.f32.gmra.mxu0 %vm64_vm0, %v1780_v16  ;;  %v857_v16 = vld [vmem:[%s2449_s4 + $0x60] sm:$0xff] }
  0x3b   :  { %634 = vmatprep.mubr.f32.mxu0 %v1678_v58 }
  0x3e   :  { %1349 = vmatmul.mubr.msk.f32.gmra.mxu0 %vm64_vm0, %v1801_v21  ;;  %v852_v21 = vld [vmem:[%s2449_s4 + $0x38] sm:$0xff] }
  0x3f   :  { %640 = vmatprep.mubr.f32.mxu0 %v1678_v58 }
  0x42   :  { %1350 = vmatmul.mubr.msk.f32.gmra.mxu0 %vm64_vm0, %v1812_v24  ;;  %v849_v24 = vld [vmem:[%s2449_s4 + $0x20] sm:$0xff] }
  0x43   :  { %646 = vmatprep.mubr.f32.mxu0 %v1678_v58 }
  0x46   :  { %1351 = vmatmul.mubr.msk.f32.gmra.mxu0 %vm64_vm0, %v1836_v30 }
  0x47   :  { %652 = vmatprep.mubr.f32.mxu0 %v1678_v58 }
  0x4a   :  { %1352 = vmatmul.mubr.msk.f32.gmra.mxu0 %vm64_vm0, %v1844_v32 }
  0x4b   :  { %658 = vmatprep.mubr.f32.mxu0 %v1678_v58 }
  0x4e   :  { %1353 = vmatmul.mubr.msk.f32.gmra.mxu0 %vm64_vm0, %v1862_v36 }
  0x4f   :  { %664 = vmatprep.mubr.f32.mxu0 %v1678_v58 }
  0x52   :  { %1354 = vmatmul.mubr.msk.f32.gmra.mxu0 %vm64_vm0, %v1870_v38 }
  0x53   :  { %670 = vmatprep.mubr.f32.mxu0 %v1678_v58 }
  0x56   :  { %1355 = vmatmul.mubr.msk.f32.gmra.mxu0 %vm64_vm0, %v1888_v42 }
  0x57   :  { %676 = vmatprep.mubr.f32.mxu0 %v1678_v58 }
  0x5a   :  { %1356 = vmatmul.mubr.msk.f32.gmra.mxu0 %vm64_vm0, %v1896_v44 }
  0x5b   :  { %682 = vmatprep.mubr.f32.mxu0 %v1678_v58 }
  0x5e   :  { %1357 = vmatmul.mubr.msk.f32.gmra.mxu0 %vm64_vm0, %v36_v48 }
  0x5f   :  { %688 = vmatprep.mubr.f32.mxu0 %v1678_v58 }
  0x62   :  { %1358 = vmatmul.mubr.msk.f32.gmra.mxu0 %vm64_vm0, %v37_v50 }
  0x63   :  { %694 = vmatprep.mubr.f32.mxu0 %v1678_v58 }
  0x66   :  { %1359 = vmatmul.mubr.msk.f32.gmra.mxu0 %vm64_vm0, %v38_v54 }
  0xca   :  { %v1478_v61 = vpop.f32.mrf.mxu0 }
  0xcc   :  { %v179_v62 = vpop.f32.mrf.mxu0 }
  0xcd   :  { %395 = vmatmul.mubr.f32.vlgmr.msra.gmra.mxu1 %v179_v62 }
  0xce   :  { %400 = vmatprep.mubr.f32.mxu1 %v1678_v58  ;;  %v1481_v63 = vpop.f32.mrf.mxu0  ;;  %1501 = vmatpush3.msra.mxu1 %v860_v13 }
  0xcf   :  { %1502 = vmatprep.subr.mxu1 %v859_v14 }
  0xd0   :  { %v189_v0 = vpop.f32.mrf.mxu0  ;;  %1503 = vmatpush3.msra.mxu1 %v859_v14 }
  0xd1   :  { %401 = vmatmul.mubr.f32.gmra.mxu1 %v1478_v61  ;;  %1504 = vmatprep.subr.mxu1 %v858_v15 }
  0xd2   :  { %406 = vmatprep.mubr.f32.mxu1 %v1678_v58  ;;  %v1484_v1 = vpop.f32.mrf.mxu0  ;;  %1505 = vmatpush3.msra.mxu1 %v858_v15 }
  0xd3   :  { %1506 = vmatprep.subr.mxu1 %v857_v16 }
  0xd4   :  { %v199_v2 = vpop.f32.mrf.mxu0  ;;  %1507 = vmatpush3.msra.mxu1 %v857_v16 }
  0xd5   :  { %407 = vmatmul.mubr.f32.gmra.mxu1 %v189_v0  ;;  %1508 = vmatprep.subr.mxu1 %v856_v17 }
  0xd6   :  { %412 = vmatprep.mubr.f32.mxu1 %v1678_v58  ;;  %v1487_v3 = vpop.f32.mrf.mxu0  ;;  %1509 = vmatpush3.msra.mxu1 %v856_v17 }
  0xd7   :  { %1510 = vmatprep.subr.mxu1 %v855_v18 }
  0xd8   :  { %v209_v4 = vpop.f32.mrf.mxu0  ;;  %1511 = vmatpush3.msra.mxu1 %v855_v18 }
  0xd9   :  { %413 = vmatmul.mubr.f32.gmra.mxu1 %v1481_v63  ;;  %1512 = vmatprep.subr.mxu1 %v854_v19 }
  0xda   :  { %418 = vmatprep.mubr.f32.mxu1 %v1678_v58  ;;  %v1490_v5 = vpop.f32.mrf.mxu0  ;;  %1513 = vmatpush3.msra.mxu1 %v854_v19 }
  0xdb   :  { %1514 = vmatprep.subr.mxu1 %v853_v20 }
  0xdc   :  { %v219_v6 = vpop.f32.mrf.mxu0  ;;  %1515 = vmatpush3.msra.mxu1 %v853_v20 }
  0xdd   :  { %419 = vmatmul.mubr.f32.gmra.mxu1 %v199_v2  ;;  %1516 = vmatprep.subr.mxu1 %v852_v21 }
  0xde   :  { %424 = vmatprep.mubr.f32.mxu1 %v1678_v58  ;;  %v1493_v7 = vpop.f32.mrf.mxu0  ;;  %1517 = vmatpush3.msra.mxu1 %v852_v21 }
  0xdf   :  { %1518 = vmatprep.subr.mxu1 %v851_v22 }
  0xe0   :  { %v229_v8 = vpop.f32.mrf.mxu0  ;;  %1519 = vmatpush3.msra.mxu1 %v851_v22 }
  0xe1   :  { %425 = vmatmul.mubr.f32.gmra.mxu1 %v1484_v1  ;;  %1520 = vmatprep.subr.mxu1 %v850_v23 }
  0xe2   :  { %430 = vmatprep.mubr.f32.mxu1 %v1678_v58  ;;  %v1496_v9 = vpop.f32.mrf.mxu0  ;;  %1521 = vmatpush3.msra.mxu1 %v850_v23 }
  0xe3   :  { %1522 = vmatprep.subr.mxu1 %v849_v24 }
  0xe4   :  { %v239_v10 = vpop.f32.mrf.mxu0  ;;  %1523 = vmatpush3.msra.mxu1 %v849_v24 }
  0xe5   :  { %431 = vmatmul.mubr.f32.gmra.mxu1 %v209_v4  ;;  %1524 = vmatprep.subr.mxu1 %v848_v25 }
  0xe6   :  { %436 = vmatprep.mubr.f32.mxu1 %v1678_v58  ;;  %v1499_v11 = vpop.f32.mrf.mxu0  ;;  %1525 = vmatpush3.msra.mxu1 %v848_v25 }
  0xe7   :  { %1526 = vmatprep.subr.mxu1 %v847_v26 }
  0xe8   :  { %v249_v12 = vpop.f32.mrf.mxu0  ;;  %1527 = vmatpush3.msra.mxu1 %v847_v26 }
  0xe9   :  { %437 = vmatmul.mubr.f32.gmra.mxu1 %v1487_v3  ;;  %1528 = vmatprep.subr.mxu1 %v846_v27 }
  0xea   :  { %442 = vmatprep.mubr.f32.mxu1 %v1678_v58  ;;  %1529 = vmatpush3.msra.mxu1 %v846_v27  ;;  %v606_v29 = vpop.f32.mrf.mxu0 }
  0xeb   :  { %1530 = vmatprep.subr.mxu1 %v845_v28 }
  0xec   :  { %1531 = vmatpush3.msra.mxu1 %v845_v28  ;;  %v2059_v30 = vpop.f32.mrf.mxu0 }
  0xed   :  { %443 = vmatmul.mubr.f32.gmra.mxu1 %v219_v6 }
  0xee   :  { %448 = vmatprep.mubr.f32.mxu1 %v1678_v58  ;;  %v612_v31 = vpop.f32.mrf.mxu0 }
  0xf0   :  { %v2061_v32 = vpop.f32.mrf.mxu0 }
  0xf1   :  { %449 = vmatmul.mubr.f32.gmra.mxu1 %v1490_v5 }
  0xf2   :  { %454 = vmatprep.mubr.f32.mxu1 %v1678_v58  ;;  %v618_v33 = vpop.f32.mrf.mxu0 }
  0xf4   :  { %v2063_v34 = vpop.f32.mrf.mxu0 }
  0xf5   :  { %455 = vmatmul.mubr.f32.gmra.mxu1 %v229_v8 }
  0xf6   :  { %460 = vmatprep.mubr.f32.mxu1 %v1678_v58  ;;  %v624_v35 = vpop.f32.mrf.mxu0 }
  0xf8   :  { %v2065_v36 = vpop.f32.mrf.mxu0 }
  0xf9   :  { %461 = vmatmul.mubr.f32.gmra.mxu1 %v1493_v7 }
  0xfa   :  { %466 = vmatprep.mubr.f32.mxu1 %v1678_v58  ;;  %v630_v37 = vpop.f32.mrf.mxu0 }
  0xfc   :  { %v2099_v38 = vpop.f32.mrf.mxu0 }
  0xfd   :  { %467 = vmatmul.mubr.f32.gmra.mxu1 %v239_v10 }
  0xfe   :  { %472 = vmatprep.mubr.f32.mxu1 %v1678_v58  ;;  %v636_v39 = vpop.f32.mrf.mxu0 }
 0x100   :  { %v2101_v40 = vpop.f32.mrf.mxu0 }
 0x101   :  { %473 = vmatmul.mubr.f32.gmra.mxu1 %v1496_v9 }
 0x102   :  { %478 = vmatprep.mubr.f32.mxu1 %v1678_v58  ;;  %v642_v41 = vpop.f32.mrf.mxu0 }
 0x104   :  { %v2103_v42 = vpop.f32.mrf.mxu0 }
 0x105   :  { %479 = vmatmul.mubr.f32.gmra.mxu1 %v249_v12 }
 0x106   :  { %484 = vmatprep.mubr.f32.mxu1 %v1678_v58  ;;  %v648_v43 = vpop.f32.mrf.mxu0 }
 0x108   :  { %v2105_v45 = vpop.f32.mrf.mxu0 }
 0x109   :  { %485 = vmatmul.mubr.f32.gmra.mxu1 %v1499_v11 }
 0x10a   :  { %v654_v50 = vpop.f32.mrf.mxu0 }
 0x10c   :  { %v2117_v55 = vpop.f32.mrf.mxu0 }
 0x10e   :  { %v660_v60 = vpop.f32.mrf.mxu0 }
 0x110   :  { %v2129_v1 = vpop.f32.mrf.mxu0 }
 0x112   :  { %v666_v8 = vpop.f32.mrf.mxu0 }
 0x114   :  { %v2141_v15 = vpop.f32.mrf.mxu0 }
 0x116   :  { %v672_v22 = vpop.f32.mrf.mxu0 }
 0x18d   :  { %v396_v44 = vpop.f32.mrf.mxu1 }
 0x18e   :  { %v2107_v46 = vadd.f32 %v606_v29, %v396_v44  ;;  %v2153_v29 = vpop.f32.mrf.mxu0 }
 0x18f   :  { %v2109_v47 = vpop.f32.mrf.mxu1 }
 0x190   :  { %v1360_v48 = vmul.f32 -1.442695, %v2107_v46 }
 0x191   :  { %v402_v49 = vpop.f32.mrf.mxu1 }
 0x192   :  { %1614 = vpow2.f32 %v1360_v48  ;;  %v2112_v51 = vadd.f32 %v612_v31, %v402_v49  ;;  %v678_v49 = vpop.f32.mrf.mxu0 }
 0x193   :  { %v2114_v52 = vpop.f32.mrf.mxu1 }
 0x194   :  { %v1361_v53 = vmul.f32 -1.442695, %v2112_v51 }
 0x195   :  { %v408_v54 = vpop.f32.mrf.mxu1 }
 0x196   :  { %1616 = vpow2.f32 %v1361_v53  ;;  %v2119_v56 = vadd.f32 %v618_v33, %v408_v54 }
 0x197   :  { %v2121_v57 = vpop.f32.mrf.mxu1 }
 0x198   :  { %v1362_v58 = vmul.f32 -1.442695, %v2119_v56 }
 0x199   :  { %v414_v59 = vpop.f32.mrf.mxu1 }
 0x19a   :  { %1618 = vpow2.f32 %v1362_v58  ;;  %v2124_v61 = vadd.f32 %v624_v35, %v414_v59 }
 0x19b   :  { %v2126_v62 = vpop.f32.mrf.mxu1 }
 0x19c   :  { %v1363_v63 = vmul.f32 -1.442695, %v2124_v61 }
 0x19d   :  { %v420_v0 = vpop.f32.mrf.mxu1 }
 0x19e   :  { %1620 = vpow2.f32 %v1363_v63  ;;  %v2131_v2 = vadd.f32 %v630_v37, %v420_v0 }
 0x19f   :  { %v1615_v3 = vpop.eup %1614  ;;  %v2133_v4 = vpop.f32.mrf.mxu1 }
 0x1a0   :  { %v749_v5 = vadd.f32 1.0, %v1615_v3  ;;  %v1364_v6 = vmul.f32 -1.442695, %v2131_v2  ;;  %v2171_v3 = vpop.f32.mrf.mxu0 }
 0x1a1   :  { %v426_v7 = vpop.f32.mrf.mxu1 }
 0x1a2   :  { %1622 = vrcp.f32 %v749_v5  ;;  %v2136_v9 = vadd.f32 %v636_v39, %v426_v7 }
 0x1a3   :  { %v1617_v10 = vpop.eup %1616  ;;  %1624 = vpow2.f32 %v1364_v6  ;;  %v2138_v11 = vpop.f32.mrf.mxu1 }
 0x1a4   :  { %v750_v12 = vadd.f32 1.0, %v1617_v10  ;;  %v1365_v13 = vmul.f32 -1.442695, %v2136_v9 }
 0x1a5   :  { %v432_v14 = vpop.f32.mrf.mxu1 }
 0x1a6   :  { %1626 = vrcp.f32 %v750_v12  ;;  %v2143_v16 = vadd.f32 %v642_v41, %v432_v14  ;;  %v609_v41 = vadd.f32 %v2059_v30, %v2109_v47  ;;  %v684_v14 = vpop.f32.mrf.mxu0 }
 0x1a7   :  { %v1619_v17 = vpop.eup %1618  ;;  %1628 = vpow2.f32 %v1365_v13  ;;  %v2145_v18 = vpop.f32.mrf.mxu1 }
 0x1a8   :  { %v751_v19 = vadd.f32 1.0, %v1619_v17  ;;  %v1366_v20 = vmul.f32 -1.442695, %v2143_v16 }
 0x1a9   :  { %v438_v21 = vpop.f32.mrf.mxu1 }
 0x1aa   :  { %1630 = vrcp.f32 %v751_v19  ;;  %v2148_v23 = vadd.f32 %v648_v43, %v438_v21 }
 0x1ab   :  { %v1621_v24 = vpop.eup %1620  ;;  %1632 = vpow2.f32 %v1366_v20  ;;  %v2150_v25 = vpop.f32.mrf.mxu1 }
 0x1ac   :  { %v752_v26 = vadd.f32 1.0, %v1621_v24  ;;  %v1367_v27 = vmul.f32 -1.442695, %v2148_v23 }
 0x1ad   :  { %v444_v28 = vpop.f32.mrf.mxu1 }
 0x1ae   :  { %1634 = vrcp.f32 %v752_v26  ;;  %v2155_v31 = vadd.f32 %v654_v50, %v444_v28 }
 0x1af   :  { %v1623_v33 = vpop.eup %1622  ;;  %1636 = vpow2.f32 %v1367_v27  ;;  %v2157_v35 = vpop.f32.mrf.mxu1 }
 0x1b0   :  { %v1625_v37 = vpop.eup %1624  ;;  %v797_v39 = vmul.f32 %v1623_v33, %v2107_v46  ;;  %v1368_v43 = vmul.f32 -1.442695, %v2155_v31  ;;  %v615_v46 = vadd.f32 %v2061_v32, %v2114_v52  ;;  %v621_v32 = vadd.f32 %v2063_v34, %v2121_v57  ;;  %v2189_v27 = vpop.f32.mrf.mxu0 }
 0x1b1   :  { %v753_v44 = vadd.f32 1.0, %v1625_v37  ;;  %v450_v48 = vpop.f32.mrf.mxu1  ;;  %v627_v34 = vadd.f32 %v2065_v36, %v2126_v62  ;;  %v633_v62 = vadd.f32 %v2099_v38, %v2133_v4 }
 0x1b2   :  { %v813_v53 = vmul.f32 %v797_v39, %v609_v41  ;;  %1638 = vpow2.f32 %v1368_v43  ;;  %v2163_v54 = vadd.f32 %v660_v60, %v450_v48 }
 0x1b3   :  { %v1627_v50 = vpop.eup %1626  ;;  %1640 = vrcp.f32 %v753_v44  ;;  %v2165_v58 = vpop.f32.mrf.mxu1 }
 0x1b4   :  { %v1629_v59 = vpop.eup %1628  ;;  %v798_v63 = vmul.f32 %v1627_v50, %v2112_v51  ;;  %v1369_v30 = vmul.f32 -1.442695, %v2163_v54  ;;  %1532 = vmatprep.mubr.f32.mxu1 %v813_v53  ;;  %v690_v44 = vpop.f32.mrf.mxu0 }
 0x1b5   :  { %v754_v47 = vadd.f32 1.0, %v1629_v59  ;;  %v456_v0 = vpop.f32.mrf.mxu1 }
 0x1b6   :  { %v814_v5 = vmul.f32 %v798_v63, %v615_v46  ;;  %1642 = vpow2.f32 %v1369_v30  ;;  %v2173_v60 = vadd.f32 %v666_v8, %v456_v0  ;;  %v2207_v4 = vpop.f32.mrf.mxu0 }
 0x1b7   :  { %v1631_v6 = vpop.eup %1630  ;;  %1644 = vrcp.f32 %v754_v47  ;;  %v2175_v7 = vpop.f32.mrf.mxu1 }
 0x1b8   :  { %v1633_v10 = vpop.eup %1632  ;;  %v799_v51 = vmul.f32 %v1631_v6, %v2119_v56  ;;  %v1370_v52 = vmul.f32 -1.442695, %v2173_v60  ;;  %1533 = vmatmul.mubr.f32.vlgmr.msra.gmra.mxu1 %v814_v5 }
 0x1b9   :  { %v755_v12 = vadd.f32 1.0, %v1633_v10  ;;  %v462_v13 = vpop.f32.mrf.mxu1 }
 0x1ba   :  { %v815_v17 = vmul.f32 %v799_v51, %v621_v32  ;;  %1646 = vpow2.f32 %v1370_v52  ;;  %v2181_v8 = vadd.f32 %v672_v22, %v462_v13 }
 0x1bb   :  { %v1635_v19 = vpop.eup %1634  ;;  %1648 = vrcp.f32 %v755_v12  ;;  %v2183_v20 = vpop.f32.mrf.mxu1 }
 0x1bc   :  { %v1637_v21 = vpop.eup %1636  ;;  %v800_v56 = vmul.f32 %v1635_v19, %v2124_v61  ;;  %v1371_v57 = vmul.f32 -1.442695, %v2181_v8  ;;  %1535 = vmatprep.mubr.f32.mxu1 %v815_v17 }
 0x1bd   :  { %v756_v24 = vadd.f32 1.0, %v1637_v21  ;;  %v468_v26 = vpop.f32.mrf.mxu1 }
 0x1be   :  { %v816_v28 = vmul.f32 %v800_v56, %v627_v34  ;;  %1650 = vpow2.f32 %v1371_v57  ;;  %v2191_v22 = vadd.f32 %v678_v49, %v468_v26 }
 0x1bf   :  { %v1639_v33 = vpop.eup %1638  ;;  %1652 = vrcp.f32 %v756_v24  ;;  %v2193_v37 = vpop.f32.mrf.mxu1  ;;  %v657_v24 = vadd.f32 %v2117_v55, %v2157_v35  ;;  %v669_v55 = vadd.f32 %v2141_v15, %v2175_v7 }
 0x1c0   :  { %v1641_v39 = vpop.eup %1640  ;;  %v757_v61 = vadd.f32 1.0, %v1639_v33  ;;  %v1372_v41 = vmul.f32 -1.442695, %v2191_v22  ;;  %1536 = vmatmul.mubr.f32.gmra.mxu1 %v816_v28  ;;  %v681_v15 = vadd.f32 %v2171_v3, %v2193_v37 }
 0x1c1   :  { %v801_v36 = vmul.f32 %v1641_v39, %v2131_v2  ;;  %v474_v43 = vpop.f32.mrf.mxu1  ;;  %v639_v2 = vadd.f32 %v2101_v40, %v2138_v11  ;;  %v645_v40 = vadd.f32 %v2103_v42, %v2145_v18  ;;  %v696_v11 = vpop.f32.mrf.mxu0 }
 0x1c2   :  { %1654 = vrcp.f32 %v757_v61  ;;  %v2199_v48 = vadd.f32 %v684_v14, %v474_v43 }
 0x1c3   :  { %v1643_v49 = vpop.eup %1642  ;;  %v817_v53 = vmul.f32 %v801_v36, %v633_v62  ;;  %1656 = vpow2.f32 %v1372_v41  ;;  %v2201_v50 = vpop.f32.mrf.mxu1 }
 0x1c4   :  { %v1645_v59 = vpop.eup %1644  ;;  %v758_v63 = vadd.f32 1.0, %v1643_v49  ;;  %v1373_v46 = vmul.f32 -1.442695, %v2199_v48  ;;  %v698_v3 = vpop.f32.mrf.mxu0 }
 0x1c5   :  { %v802_v30 = vmul.f32 %v1645_v59, %v2136_v9  ;;  %1538 = vmatprep.mubr.f32.mxu1 %v817_v53  ;;  %v480_v38 = vpop.f32.mrf.mxu1 }
 0x1c6   :  { %1658 = vrcp.f32 %v758_v63  ;;  %v2209_v47 = vadd.f32 %v690_v44, %v480_v38 }
 0x1c7   :  { %v1647_v0 = vpop.eup %1646  ;;  %v818_v5 = vmul.f32 %v802_v30, %v639_v2  ;;  %1660 = vpow2.f32 %v1373_v46  ;;  %v2211_v6 = vpop.f32.mrf.mxu1 }
 0x1c8   :  { %v1649_v10 = vpop.eup %1648  ;;  %v759_v51 = vadd.f32 1.0, %v1647_v0  ;;  %v1374_v32 = vmul.f32 -1.442695, %v2209_v47  ;;  %v693_v30 = vadd.f32 %v2207_v4, %v2211_v6  ;;  %v1063_v4 = vld [vmem:[%s2450_s5 + $0x28] sm:$0xff]  ;;  %v1060_v6 = vld [vmem:[%s2450_s5 + $0x10] sm:$0xff] }
 0x1c9   :  { %v803_v9 = vmul.f32 %v1649_v10, %v2143_v16  ;;  %1539 = vmatmul.mubr.f32.gmra.mxu1 %v818_v5  ;;  %v486_v52 = vpop.f32.mrf.mxu1  ;;  %v651_v16 = vadd.f32 %v2105_v45, %v2150_v25  ;;  %v663_v45 = vadd.f32 %v2129_v1, %v2165_v58  ;;  %v675_v1 = vadd.f32 %v2153_v29, %v2183_v20  ;;  %v1061_v5 = vld [vmem:[%s2450_s5 + $0x18] sm:$0xff]  ;;  %v830_v10 = vld [vmem:[#allocation2 + $0x8] sm:$0xff] }
 0x1ca   :  { %1662 = vrcp.f32 %v759_v51  ;;  %v2217_v12 = vadd.f32 %v696_v11, %v486_v52  ;;  %v1059_v51 = vld [vmem:[%s2450_s5 + $0x8] sm:$0xff] }
 0x1cb   :  { %v1651_v13 = vpop.eup %1650  ;;  %v819_v14 = vmul.f32 %v803_v9, %v645_v40  ;;  %1664 = vpow2.f32 %v1374_v32  ;;  %v829_v9 = vld [vmem:[#allocation2] sm:$0xff] }
 0x1cc   :  { %v1653_v17 = vpop.eup %1652  ;;  %v760_v19 = vadd.f32 1.0, %v1651_v13  ;;  %v1375_v21 = vmul.f32 -1.442695, %v2217_v12  ;;  %v1058_v40 = vld [vmem:[%s2450_s5] sm:$0xff]  ;;  %v832_v13 = vld [vmem:[#allocation2 + $0x18] sm:$0xff] }
 0x1cd   :  { %v804_v56 = vmul.f32 %v1653_v17, %v2148_v23  ;;  %1541 = vmatprep.mubr.f32.mxu1 %v819_v14  ;;  %v831_v17 = vld [vmem:[#allocation2 + $0x10] sm:$0xff] }
 0x1ce   :  { %1666 = vrcp.f32 %v760_v19 }
 0x1cf   :  { %v1655_v42 = vpop.eup %1654  ;;  %v820_v18 = vmul.f32 %v804_v56, %v651_v16  ;;  %1668 = vpow2.f32 %v1375_v21 }
 0x1d0   :  { %v1657_v34 = vpop.eup %1656  ;;  %v805_v57 = vmul.f32 %v1655_v42, %v2155_v31  ;;  %v834_v42 = vld [vmem:[#allocation2 + $0x28] sm:$0xff] }
 0x1d1   :  { %v761_v26 = vadd.f32 1.0, %v1657_v34  ;;  %1542 = vmatmul.mubr.f32.gmra.mxu1 %v820_v18 }
 0x1d2   :  { %v821_v28 = vmul.f32 %v805_v57, %v657_v24  ;;  %v833_v57 = vld [vmem:[#allocation2 + $0x20] sm:$0xff] }
 0x1d3   :  { %v1659_v33 = vpop.eup %1658  ;;  %1670 = vrcp.f32 %v761_v26 }
 0x1d4   :  { %v1661_v23 = vpop.eup %1660  ;;  %v806_v39 = vmul.f32 %v1659_v33, %v2163_v54  ;;  %1544 = vmatprep.mubr.f32.mxu1 %v821_v28 }
 0x1d5   :  { %v762_v25 = vadd.f32 1.0, %v1661_v23 }
 0x1d6   :  { %v822_v61 = vmul.f32 %v806_v39, %v663_v45  ;;  %v836_v39 = vld [vmem:[#allocation2 + $0x38] sm:$0xff] }
 0x1d7   :  { %v1663_v41 = vpop.eup %1662  ;;  %1672 = vrcp.f32 %v762_v25  ;;  %v835_v25 = vld [vmem:[#allocation2 + $0x30] sm:$0xff] }
 0x1d8   :  { %v1665_v31 = vpop.eup %1664  ;;  %v807_v36 = vmul.f32 %v1663_v41, %v2173_v60  ;;  %1545 = vmatmul.mubr.f32.gmra.mxu1 %v822_v61 }
 0x1d9   :  { %v763_v35 = vadd.f32 1.0, %v1665_v31 }
 0x1da   :  { %v823_v62 = vmul.f32 %v807_v36, %v669_v55 }
 0x1db   :  { %v1667_v43 = vpop.eup %1666  ;;  %1674 = vrcp.f32 %v763_v35  ;;  %v838_v35 = vld [vmem:[#allocation2 + $0x48] sm:$0xff] }
 0x1dc   :  { %v1669_v54 = vpop.eup %1668  ;;  %v808_v44 = vmul.f32 %v1667_v43, %v2181_v8  ;;  %1547 = vmatprep.mubr.f32.mxu1 %v823_v62  ;;  %v687_v8 = vadd.f32 %v2189_v27, %v2201_v50  ;;  %v1065_v27 = vld [vmem:[%s2450_s5 + $0x38] sm:$0xff]  ;;  %v1064_v50 = vld [vmem:[%s2450_s5 + $0x30] sm:$0xff]  ;;  %v837_v43 = vld [vmem:[#allocation2 + $0x40] sm:$0xff] }
 0x1dd   :  { %v764_v58 = vadd.f32 1.0, %v1669_v54  ;;  %1556 = vmatprep.subr.mxu0 %v1065_v27  ;;  %1596 = vmatprep.subr.mxu1 %v1065_v27 }
 0x1de   :  { %v824_v49 = vmul.f32 %v808_v44, %v675_v1  ;;  %1557 = vmatpush3.msra.mxu0 %v1065_v27  ;;  %1604 = vmatpush3.msra.mxu1 %v1065_v27  ;;  %v843_v27 = vld [vmem:[#allocation2 + $0x70] sm:$0xff] }
 0x1df   :  { %1676 = vrcp.f32 %v764_v58  ;;  %1558 = vmatprep.subr.mxu0 %v1064_v50  ;;  %1597 = vmatprep.subr.mxu1 %v1064_v50 }
 0x1e0   :  { %v1671_v53 = vpop.eup %1670  ;;  %1548 = vmatmul.mubr.f32.gmra.mxu1 %v824_v49  ;;  %1559 = vmatpush3.msra.mxu0 %v1064_v50 }
 0x1e1   :  { %v809_v60 = vmul.f32 %v1671_v53, %v2191_v22  ;;  %v488_v22 = vpop.f32.mrf.mxu1  ;;  %1605 = vmatpush3.msra.mxu1 %v1064_v50  ;;  %1560 = vmatprep.subr.mxu0 %v1063_v4  ;;  %v840_v53 = vld [vmem:[#allocation2 + $0x58] sm:$0xff] }
 0x1e2   :  { %v699_v0 = vadd.f32 %v698_v3, %v488_v22  ;;  %1598 = vmatprep.subr.mxu1 %v1063_v4  ;;  %1561 = vmatpush3.msra.mxu0 %v1063_v4 }
 0x1e3   :  { %v825_v7 = vmul.f32 %v809_v60, %v681_v15  ;;  %1606 = vmatpush3.msra.mxu1 %v1063_v4  ;;  %v839_v15 = vld [vmem:[#allocation2 + $0x50] sm:$0xff] }
 0x1e4   :  { %v1673_v59 = vpop.eup %1672 }
 0x1e5   :  { %v810_v63 = vmul.f32 %v1673_v59, %v2199_v48  ;;  %1550 = vmatprep.mubr.f32.mxu1 %v825_v7 }
 0x1e7   :  { %v826_v29 = vmul.f32 %v810_v63, %v687_v8 }
 0x1e8   :  { %v1675_v20 = vpop.eup %1674 }
 0x1e9   :  { %v811_v46 = vmul.f32 %v1675_v20, %v2209_v47  ;;  %1551 = vmatmul.mubr.f32.gmra.mxu1 %v826_v29  ;;  %v1062_v47 = vld [vmem:[%s2450_s5 + $0x20] sm:$0xff]  ;;  %s1679_s5 = smov 96   ;;  %v842_v20 = vld [vmem:[#allocation2 + $0x68] sm:$0xff] }
 0x1ea   :  { %1562 = vmatprep.subr.mxu0 %v1062_v47  ;;  %1599 = vmatprep.subr.mxu1 %v1062_v47 }
 0x1eb   :  { %v827_v2 = vmul.f32 %v811_v46, %v693_v30  ;;  %1563 = vmatpush3.msra.mxu0 %v1062_v47  ;;  %1607 = vmatpush3.msra.mxu1 %v1062_v47  ;;  %v841_v30 = vld [vmem:[#allocation2 + $0x60] sm:$0xff] }
 0x1ec   :  { %v1677_v38 = vpop.eup %1676  ;;  %1564 = vmatprep.subr.mxu0 %v1061_v5  ;;  %1600 = vmatprep.subr.mxu1 %v1061_v5 }
 0x1ed   :  { %v812_v37 = vmul.f32 %v1677_v38, %v2217_v12  ;;  %1553 = vmatprep.mubr.f32.mxu1 %v827_v2  ;;  %1565 = vmatpush3.msra.mxu0 %v1061_v5 }
 0x1ee   :  { %1608 = vmatpush3.msra.mxu1 %v1061_v5  ;;  %1566 = vmatprep.subr.mxu0 %v1060_v6 }
 0x1ef   :  { %v828_v48 = vmul.f32 %v812_v37, %v699_v0  ;;  %1601 = vmatprep.subr.mxu1 %v1060_v6  ;;  %1567 = vmatpush3.msra.mxu0 %v1060_v6  ;;  %v844_v0 = vld [vmem:[#allocation2 + $0x78] sm:$0xff] }
 0x1f0   :  { %1609 = vmatpush3.msra.mxu1 %v1060_v6  ;;  %1568 = vmatprep.subr.mxu0 %v1059_v51 }
 0x1f1   :  { %1554 = vmatmul.mubr.f32.gmra.mxu1 %v828_v48  ;;  %1602 = vmatprep.subr.mxu1 %v1059_v51 }
 0x1f2   :  { %1569 = vmatpush3.msra.mxu0 %v1059_v51  ;;  %1610 = vmatpush3.msra.mxu1 %v1059_v51 }
 0x1f3   :  { %1570 = vmatprep.subr.mxu0 %v1058_v40  ;;  %1603 = vmatprep.subr.mxu1 %v1058_v40 }
 0x1f4   :  { %1571 = vmatpush3.msra.mxu0 %v1058_v40  ;;  %1611 = vmatpush3.msra.mxu1 %v1058_v40 }
 0x278   :  { %v1534_v32 = vpop.f32.mrf.mxu1 }
 0x279   :  { %v1007_v11 = vadd.f32 %v1534_v32, %v830_v10 }
 0x27a   :  { %v927_v52 = vpop.f32.mrf.mxu1 }
 0x27b   :  { %1024 = vst.msk [vmem:[#allocation2 + $0x8] sm:$0xff] %vm43_vm1, %v1007_v11  ;;  %v1006_v12 = vadd.f32 %v927_v52, %v829_v9 }
 0x27d   :  { %1023 = vst.msk [vmem:[#allocation2] sm:$0xff] %vm43_vm1, %v1006_v12 }
 0x280   :  { %v1537_v14 = vpop.f32.mrf.mxu1 }
 0x281   :  { %v1009_v19 = vadd.f32 %v1537_v14, %v832_v13 }
 0x282   :  { %v937_v21 = vpop.f32.mrf.mxu1  ;;  %v2277_v18 = vld [vmem:[#allocation2 + $0x8] sm:$0xff] }
 0x283   :  { %1026 = vst.msk [vmem:[#allocation2 + $0x18] sm:$0xff] %vm43_vm1, %v1009_v19  ;;  %v1008_v56 = vadd.f32 %v937_v21, %v831_v17 }
 0x284   :  { %v2272_v16 = vld [vmem:[#allocation2] sm:$0xff] }
 0x285   :  { %1025 = vst.msk [vmem:[#allocation2 + $0x10] sm:$0xff] %vm43_vm1, %v1008_v56  ;;  %1082 = vrot.lane.b32.xlu0 %v2272_v16, %s1679_s5 }
 0x289   :  { %v1540_v34 = vpop.f32.mrf.mxu1  ;;  %1084 = vrot.lane.b32.xlu0 %v2277_v18, %s1679_s5 }
 0x28a   :  { %v1011_v24 = vadd.f32 %v1540_v34, %v834_v42  ;;  %v2281_v26 = vld [vmem:[#allocation2 + $0x18] sm:$0xff] }
 0x28b   :  { %v947_v28 = vpop.f32.mrf.mxu1  ;;  %1088 = vrot.lane.b32.xlu1 %v2281_v26, %s1679_s5 }
 0x28c   :  { %1028 = vst.msk [vmem:[#allocation2 + $0x28] sm:$0xff] %vm43_vm1, %v1011_v24  ;;  %v1010_v33 = vadd.f32 %v947_v28, %v833_v57  ;;  %v2287_v23 = vld [vmem:[#allocation2 + $0x10] sm:$0xff] }
 0x28e   :  { %1027 = vst.msk [vmem:[#allocation2 + $0x20] sm:$0xff] %vm43_vm1, %v1010_v33 }
 0x28f   :  { %1086 = vrot.lane.b32.xlu1 %v2287_v23, %s1679_s5 }
 0x291   :  { %v1543_v45 = vpop.f32.mrf.mxu1 }
 0x292   :  { %v1013_v61 = vadd.f32 %v1543_v45, %v836_v39 }
 0x293   :  { %v957_v41 = vpop.f32.mrf.mxu1  ;;  %v2291_v31 = vld [vmem:[#allocation2 + $0x28] sm:$0xff] }
 0x294   :  { %1030 = vst.msk [vmem:[#allocation2 + $0x38] sm:$0xff] %vm43_vm1, %v1013_v61  ;;  %v1012_v36 = vadd.f32 %v957_v41, %v835_v25  ;;  %1092 = vrot.lane.b32.xlu1 %v2291_v31, %s1679_s5 }
 0x295   :  { %v2296_v55 = vld [vmem:[#allocation2 + $0x20] sm:$0xff] }
 0x296   :  { %1029 = vst.msk [vmem:[#allocation2 + $0x30] sm:$0xff] %vm43_vm1, %v1012_v36  ;;  %1090 = vrot.lane.b32.xlu0 %v2296_v55, %s1679_s5 }
 0x298   :  { %v1546_v62 = vpop.f32.mrf.mxu1 }
 0x299   :  { %v1015_v54 = vadd.f32 %v1546_v62, %v838_v35 }
 0x29a   :  { %v967_v44 = vpop.f32.mrf.mxu1 }
 0x29b   :  { %1032 = vst.msk [vmem:[#allocation2 + $0x48] sm:$0xff] %vm43_vm1, %v1015_v54  ;;  %v1014_v1 = vadd.f32 %v967_v44, %v837_v43  ;;  %v2302_v58 = vld [vmem:[#allocation2 + $0x38] sm:$0xff] }
 0x29c   :  { %1096 = vrot.lane.b32.xlu1 %v2302_v58, %s1679_s5 }
 0x29d   :  { %1031 = vst.msk [vmem:[#allocation2 + $0x40] sm:$0xff] %vm43_vm1, %v1014_v1  ;;  %v2307_v49 = vld [vmem:[#allocation2 + $0x30] sm:$0xff] }
 0x29e   :  { %1094 = vrot.lane.b32.xlu0 %v2307_v49, %s1679_s5 }
 0x2a0   :  { %v1549_v60 = vpop.f32.mrf.mxu1 }
 0x2a1   :  { %v1017_v7 = vadd.f32 %v1549_v60, %v840_v53 }
 0x2a2   :  { %v977_v59 = vpop.f32.mrf.mxu1  ;;  %v2311_v63 = vld [vmem:[#allocation2 + $0x48] sm:$0xff] }
 0x2a3   :  { %1034 = vst.msk [vmem:[#allocation2 + $0x58] sm:$0xff] %vm43_vm1, %v1017_v7  ;;  %v1016_v8 = vadd.f32 %v977_v59, %v839_v15  ;;  %1100 = vrot.lane.b32.xlu1 %v2311_v63, %s1679_s5 }
 0x2a4   :  { %v2316_v29 = vld [vmem:[#allocation2 + $0x40] sm:$0xff] }
 0x2a5   :  { %1033 = vst.msk [vmem:[#allocation2 + $0x50] sm:$0xff] %vm43_vm1, %v1016_v8  ;;  %1098 = vrot.lane.b32.xlu0 %v2316_v29, %s1679_s5 }
 0x2a9   :  { %v1552_v46 = vpop.f32.mrf.mxu1 }
 0x2aa   :  { %v1019_v22 = vadd.f32 %v1552_v46, %v842_v20  ;;  %v2321_v2 = vld [vmem:[#allocation2 + $0x58] sm:$0xff] }
 0x2ab   :  { %v987_v38 = vpop.f32.mrf.mxu1  ;;  %1104 = vrot.lane.b32.xlu1 %v2321_v2, %s1679_s5 }
 0x2ac   :  { %1036 = vst.msk [vmem:[#allocation2 + $0x68] sm:$0xff] %vm43_vm1, %v1019_v22  ;;  %v1018_v3 = vadd.f32 %v987_v38, %v841_v30  ;;  %v2326_v37 = vld [vmem:[#allocation2 + $0x50] sm:$0xff] }
 0x2ad   :  { %1102 = vrot.lane.b32.xlu0 %v2326_v37, %s1679_s5 }
 0x2ae   :  { %1035 = vst.msk [vmem:[#allocation2 + $0x60] sm:$0xff] %vm43_vm1, %v1018_v3 }
 0x2b1   :  { %v1555_v48 = vpop.f32.mrf.mxu1 }
 0x2b2   :  { %v1021_v50 = vadd.f32 %v1555_v48, %v844_v0 }
 0x2b3   :  { %v997_v4 = vpop.f32.mrf.mxu1  ;;  %v2337_v6 = vld [vmem:[#allocation2 + $0x68] sm:$0xff] }
 0x2b4   :  { %1038 = vst.msk [vmem:[#allocation2 + $0x78] sm:$0xff] %vm43_vm1, %v1021_v50  ;;  %v1020_v47 = vadd.f32 %v997_v4, %v843_v27 }
 0x2b5   :  { %v2332_v5 = vld [vmem:[#allocation2 + $0x60] sm:$0xff] }
 0x2b6   :  { %1037 = vst.msk [vmem:[#allocation2 + $0x70] sm:$0xff] %vm43_vm1, %v1020_v47  ;;  %1106 = vrot.lane.b32.xlu0 %v2332_v5, %s1679_s5 }
 0x2ba   :  { %1108 = vrot.lane.b32.xlu0 %v2337_v6, %s1679_s5 }
 0x2bb   :  { %v2345_v51 = vld [vmem:[#allocation2 + $0x78] sm:$0xff] }
 0x2bd   :  { %v2341_v10 = vld [vmem:[#allocation2 + $0x70] sm:$0xff] }
 0x2be   :  { %1110 = vrot.lane.b32.xlu1 %v2341_v10, %s1679_s5 }
 0x2c2   :  { %1112 = vrot.lane.b32.xlu1 %v2345_v51, %s1679_s5 }
 0x2f7   :  { %v1083_v32 = vpop.permute.xlu0 %1082 }
 0x2f8   :  { %1572 = vmatprep.mubr.msk.f32.mxu0 %vm1114_vm2, %v1083_v32 }
 0x2fb   :  { %v1085_v9 = vpop.permute.xlu0 %1084 }
 0x2fc   :  { %1573 = vmatmul.mubr.msk.f32.vlgmr.msra.gmra.mxu0 %vm1114_vm2, %v1085_v9 }
 0x2fd   :  { %v1089_v40 = vpop.permute.xlu1 %1088 }
 0x301   :  { %v1087_v11 = vpop.permute.xlu1 %1086 }
 0x302   :  { %1575 = vmatprep.mubr.msk.f32.mxu0 %vm1114_vm2, %v1087_v11 }
 0x303   :  { %1576 = vmatmul.mubr.msk.f32.gmra.mxu0 %vm1114_vm2, %v1089_v40 }
 0x306   :  { %v1093_v12 = vpop.permute.xlu1 %1092 }
 0x308   :  { %v1091_v52 = vpop.permute.xlu0 %1090 }
 0x309   :  { %1578 = vmatprep.mubr.msk.f32.mxu0 %vm1114_vm2, %v1091_v52 }
 0x30a   :  { %1579 = vmatmul.mubr.msk.f32.gmra.mxu0 %vm1114_vm2, %v1093_v12 }
 0x30e   :  { %v1097_v14 = vpop.permute.xlu1 %1096 }
 0x310   :  { %v1095_v13 = vpop.permute.xlu0 %1094 }
 0x311   :  { %1581 = vmatprep.mubr.msk.f32.mxu0 %vm1114_vm2, %v1095_v13 }
 0x312   :  { %1582 = vmatmul.mubr.msk.f32.gmra.mxu0 %vm1114_vm2, %v1097_v14 }
 0x315   :  { %v1101_v19 = vpop.permute.xlu1 %1100 }
 0x317   :  { %v1099_v17 = vpop.permute.xlu0 %1098 }
 0x318   :  { %1584 = vmatprep.mubr.msk.f32.mxu0 %vm1114_vm2, %v1099_v17 }
 0x319   :  { %1585 = vmatmul.mubr.msk.f32.gmra.mxu0 %vm1114_vm2, %v1101_v19 }
 0x31d   :  { %v1105_v56 = vpop.permute.xlu1 %1104 }
 0x31f   :  { %v1103_v21 = vpop.permute.xlu0 %1102 }
 0x320   :  { %1587 = vmatprep.mubr.msk.f32.mxu0 %vm1114_vm2, %v1103_v21 }
 0x321   :  { %1588 = vmatmul.mubr.msk.f32.gmra.mxu0 %vm1114_vm2, %v1105_v56 }
 0x328   :  { %v1107_v42 = vpop.permute.xlu0 %1106 }
 0x329   :  { %1590 = vmatprep.mubr.msk.f32.mxu0 %vm1114_vm2, %v1107_v42 }
 0x32c   :  { %v1109_v34 = vpop.permute.xlu0 %1108 }
 0x32d   :  { %1591 = vmatmul.mubr.msk.f32.gmra.mxu0 %vm1114_vm2, %v1109_v34 }
 0x330   :  { %v1111_v57 = vpop.permute.xlu1 %1110 }
 0x331   :  { %1593 = vmatprep.mubr.msk.f32.mxu1 %vm1114_vm2, %v1111_v57 }
 0x334   :  { %v1113_v24 = vpop.permute.xlu1 %1112 }
 0x335   :  { %1594 = vmatmul.mubr.msk.f32.vlgmr.msra.gmra.mxu1 %vm1114_vm2, %v1113_v24 }
 0x3bc   :  { %v1574_v28 = vpop.f32.mrf.mxu0 }
 0x3bd   :  { %v1293_v33 = vadd.f32 %v1574_v28, %v2277_v18 }
 0x3be   :  { %v1213_v39 = vpop.f32.mrf.mxu0 }
 0x3bf   :  { %1309 = vst.msk [vmem:[%s2451_s6 + $0x8] sm:$0xff] %vm64_vm0, %v1293_v33  ;;  %v1292_v45 = vadd.f32 %v1213_v39, %v2272_v16 }
 0x3c1   :  { %1308 = vst.msk [vmem:[%s2451_s6] sm:$0xff] %vm64_vm0, %v1292_v45 }
 0x3c3   :  { %v1577_v25 = vpop.f32.mrf.mxu0 }
 0x3c4   :  { %v1295_v61 = vadd.f32 %v1577_v25, %v2281_v26 }
 0x3c5   :  { %v1223_v41 = vpop.f32.mrf.mxu0 }
 0x3c6   :  { %1311 = vst.msk [vmem:[%s2451_s6 + $0x18] sm:$0xff] %vm64_vm0, %v1295_v61  ;;  %v1294_v18 = vadd.f32 %v1223_v41, %v2287_v23 }
 0x3c8   :  { %1310 = vst.msk [vmem:[%s2451_s6 + $0x10] sm:$0xff] %vm64_vm0, %v1294_v18 }
 0x3ca   :  { %v1580_v16 = vpop.f32.mrf.mxu0 }
 0x3cb   :  { %v1297_v36 = vadd.f32 %v1580_v16, %v2291_v31 }
 0x3cc   :  { %v1233_v35 = vpop.f32.mrf.mxu0 }
 0x3cd   :  { %1313 = vst.msk [vmem:[%s2451_s6 + $0x28] sm:$0xff] %vm64_vm0, %v1297_v36  ;;  %v1296_v26 = vadd.f32 %v1233_v35, %v2296_v55 }
 0x3cf   :  { %1312 = vst.msk [vmem:[%s2451_s6 + $0x20] sm:$0xff] %vm64_vm0, %v1296_v26 }
 0x3d2   :  { %v1583_v23 = vpop.f32.mrf.mxu0 }
 0x3d3   :  { %v1299_v62 = vadd.f32 %v1583_v23, %v2302_v58 }
 0x3d4   :  { %v1243_v43 = vpop.f32.mrf.mxu0 }
 0x3d5   :  { %1315 = vst.msk [vmem:[%s2451_s6 + $0x38] sm:$0xff] %vm64_vm0, %v1299_v62  ;;  %v1298_v31 = vadd.f32 %v1243_v43, %v2307_v49 }
 0x3d7   :  { %1314 = vst.msk [vmem:[%s2451_s6 + $0x30] sm:$0xff] %vm64_vm0, %v1298_v31 }
 0x3d9   :  { %v1586_v55 = vpop.f32.mrf.mxu0 }
 0x3da   :  { %v1301_v54 = vadd.f32 %v1586_v55, %v2311_v63 }
 0x3db   :  { %v1253_v44 = vpop.f32.mrf.mxu0 }
 0x3dc   :  { %1317 = vst.msk [vmem:[%s2451_s6 + $0x48] sm:$0xff] %vm64_vm0, %v1301_v54  ;;  %v1300_v1 = vadd.f32 %v1253_v44, %v2316_v29 }
 0x3de   :  { %1316 = vst.msk [vmem:[%s2451_s6 + $0x40] sm:$0xff] %vm64_vm0, %v1300_v1 }
 0x3e1   :  { %v1589_v58 = vpop.f32.mrf.mxu0 }
 0x3e2   :  { %v1303_v49 = vadd.f32 %v1589_v58, %v2321_v2 }
 0x3e3   :  { %v1263_v53 = vpop.f32.mrf.mxu0 }
 0x3e4   :  { %1319 = vst.msk [vmem:[%s2451_s6 + $0x58] sm:$0xff] %vm64_vm0, %v1303_v49  ;;  %v1302_v60 = vadd.f32 %v1263_v53, %v2326_v37 }
 0x3e6   :  { %1318 = vst.msk [vmem:[%s2451_s6 + $0x50] sm:$0xff] %vm64_vm0, %v1302_v60 }
 0x3ed   :  { %v1592_v15 = vpop.f32.mrf.mxu0 }
 0x3ee   :  { %v1305_v7 = vadd.f32 %v1592_v15, %v2337_v6 }
 0x3ef   :  { %v1273_v59 = vpop.f32.mrf.mxu0 }
 0x3f0   :  { %1321 = vst.msk [vmem:[%s2451_s6 + $0x68] sm:$0xff] %vm64_vm0, %v1305_v7  ;;  %v1304_v63 = vadd.f32 %v1273_v59, %v2332_v5 }
 0x3f2   :  { %1320 = vst.msk [vmem:[%s2451_s6 + $0x60] sm:$0xff] %vm64_vm0, %v1304_v63 }
 0x3f5   :  { %v1595_v8 = vpop.f32.mrf.mxu1 }
 0x3f6   :  { %v1307_v29 = vadd.f32 %v1595_v8, %v2345_v51 }
 0x3f7   :  { %v1283_v20 = vpop.f32.mrf.mxu1 }
 0x3f8   :  { %1323 = vst.msk [vmem:[%s2451_s6 + $0x78] sm:$0xff] %vm64_vm0, %v1307_v29  ;;  %v1306_v46 = vadd.f32 %v1283_v20, %v2341_v10 }
 0x3fa   :  { %1322 = vst.msk [vmem:[%s2451_s6 + $0x70] sm:$0xff] %vm64_vm0, %v1306_v46 }

</bundles_post_ra>
